<compile_context>
chip_gen: v7x
topology: tpu7x:2x2x1
jax: 0.10.0
libtpu: 0.0.40
codegen_flags: <defaults>
</compile_context>

<pallas_src>
import jax
import jax.numpy as jnp
from jax.experimental import pallas as pl
from jax.experimental.pallas import tpu as pltpu
import numpy as np


def pathrnn_kernel(vel_ref, wih_ref, whh_ref, bias_ref, wout_ref,
                   pos_ref, u_ref):
    """Fused PathRNN forward: input projection + tanh recurrence + readout.

    vel_ref : (B, T, 2)  input velocities (batch_first, as in torch)
    wih_ref : (2, H)     W_ih^T
    whh_ref : (H, H)     W_hh^T
    bias_ref: (1, H)     b_ih + b_hh
    wout_ref: (H, 2)     W_out^T
    pos_ref : (B, T, 2)  position estimates (output)
    u_ref   : (B, T, H)  hidden states (output)
    """
    B, T, _ = vel_ref.shape
    H = whh_ref.shape[0]

    vel = vel_ref[...]          # (B, T, 2)
    wih = wih_ref[...]          # (2, H)
    whh = whh_ref[...]          # (H, H)
    bias = bias_ref[...]        # (1, H)
    wout = wout_ref[...]        # (H, 2)

    # Input projection for ALL timesteps, off the serial recurrence chain.
    # F == 2, so this is two broadcast multiply-adds on the VPU (no MXU).
    xp = (vel[:, :, 0:1] * wih[0:1, :][None, :, :]
          + vel[:, :, 1:2] * wih[1:2, :][None, :, :]
          + bias[None, :, :])                                   # (B, T, H)

    # Serial recurrence: one MXU matmul + tanh per step on the critical chain.
    # T is small and static -> fully unrolled Python loop, static ref indices.
    h = jnp.zeros((B, H), jnp.float32)
    for t in range(T):
        h = jnp.tanh(xp[:, t, :]
                     + jnp.dot(h, whh, preferred_element_type=jnp.float32))
        u_ref[:, t, :] = h
        # Readout (off the h-dependency chain), written in final layout.
        pos_ref[:, t, :] = jnp.dot(h, wout,
                                   preferred_element_type=jnp.float32)


def pathrnn_forward(vel, W_ih, W_hh, b_ih, b_hh, W_out):
    """Forward pass matching PathRNN.forward.

    vel   : (B, T, 2) float32 (batch_first, like torch.nn.RNN(batch_first=True))
    W_ih  : (H, 2)   rnn.weight_ih_l0
    W_hh  : (H, H)   rnn.weight_hh_l0
    b_ih  : (H,)     rnn.bias_ih_l0
    b_hh  : (H,)     rnn.bias_hh_l0
    W_out : (2, H)   output.weight (output_bias=False)
    returns (pos_est (B, T, 2), u_vals (B, T, H))
    """
    B, T, F = vel.shape
    H = W_hh.shape[0]
    assert F == 2, "PathRNN input_size is 2"

    vel = vel.astype(jnp.float32)
    wih_t = jnp.asarray(W_ih, jnp.float32).T                    # (2, H)
    whh_t = jnp.asarray(W_hh, jnp.float32).T                    # (H, H)
    wout_t = jnp.asarray(W_out, jnp.float32).T                  # (H, 2)
    bias = (jnp.asarray(b_ih, jnp.float32)
            + jnp.asarray(b_hh, jnp.float32)).reshape(1, H)     # (1, H)

    vmem = pl.BlockSpec(memory_space=pltpu.MemorySpace.VMEM)
    pos_est, u_vals = pl.pallas_call(
        pathrnn_kernel,
        out_shape=(jax.ShapeDtypeStruct((B, T, 2), jnp.float32),
                   jax.ShapeDtypeStruct((B, T, H), jnp.float32)),
        in_specs=[vmem, vmem, vmem, vmem, vmem],
        out_specs=(vmem, vmem),
    )(vel, wih_t, whh_t, bias, wout_t)
    return pos_est, u_vals


def init_pathrnn_params(key, n_units=32, input_size=2, out_size=2):
    """Deterministic parameter init mirroring PathRNN.__init__."""
    k_ih, k_hh = jax.random.split(key, 2)
    # weight_ih ~ Normal(0, sqrt(1/2))
    W_ih = jax.random.normal(k_ih, (n_units, input_size),
                             dtype=jnp.float32) * jnp.sqrt(0.5)
    # weight_hh : orthogonal init
    a = jax.random.normal(k_hh, (n_units, n_units), dtype=jnp.float32)
    q, r = jnp.linalg.qr(a)
    d = jnp.diag(r)
    sign = jnp.where(d == 0, 1.0, jnp.sign(d))     # guard against sign(0) == 0
    W_hh = q * sign[None, :]
    b_ih = jnp.zeros((n_units,), jnp.float32)
    b_hh = jnp.zeros((n_units,), jnp.float32)
    # output.weight zero-initialised, no bias
    W_out = jnp.zeros((out_size, n_units), jnp.float32)
    return W_ih, W_hh, b_ih, b_hh, W_out


def pathrnn_reference(vel, W_ih, W_hh, b_ih, b_hh, W_out):
    """Pure-JAX reference (lax.scan) for correctness checking."""
    B, T, _ = vel.shape
    H = W_hh.shape[0]

    def step(h, x_t):
        h_new = jnp.tanh(x_t @ W_ih.T + b_ih + h @ W_hh.T + b_hh)
        return h_new, h_new

    h0 = jnp.zeros((B, H), jnp.float32)
    _, u_tbh = jax.lax.scan(step, h0, jnp.transpose(vel, (1, 0, 2)))
    u_vals = jnp.transpose(u_tbh, (1, 0, 2))
    pos_est = u_vals @ W_out.T
    return pos_est, u_vals


if __name__ == "__main__":
    B, T, F, H = 2, 8, 2, 32

    key = jax.random.PRNGKey(0)
    k_vel, k_par, k_out = jax.random.split(key, 3)
    vel = jax.random.normal(k_vel, (B, T, F), dtype=jnp.float32)

    W_ih, W_hh, b_ih, b_hh, W_out = init_pathrnn_params(
        k_par, n_units=H, input_size=F, out_size=2)

    fwd = jax.jit(pathrnn_forward)

    # Check 1: module's actual init (W_out == 0, matching torch init).
    pos_est, u_vals = fwd(vel, W_ih, W_hh, b_ih, b_hh, W_out)
    pos_est = jax.block_until_ready(pos_est)
    u_vals = jax.block_until_ready(u_vals)

    pos_ref, u_ref = pathrnn_reference(vel, W_ih, W_hh, b_ih, b_hh, W_out)
    np.testing.assert_allclose(np.asarray(u_vals), np.asarray(u_ref),
                               rtol=1e-5, atol=1e-5)
    np.testing.assert_allclose(np.asarray(pos_est), np.asarray(pos_ref),
                               rtol=1e-5, atol=1e-5)
    assert pos_est.shape == (B, T, 2) and u_vals.shape == (B, T, H)

    # Check 2: nonzero readout weights to exercise the in-kernel readout too.
    W_out_nz = jax.random.normal(k_out, (2, H), dtype=jnp.float32) * 0.1
    pos_est2, u_vals2 = fwd(vel, W_ih, W_hh, b_ih, b_hh, W_out_nz)
    pos_est2 = jax.block_until_ready(pos_est2)
    pos_ref2, u_ref2 = pathrnn_reference(vel, W_ih, W_hh, b_ih, b_hh, W_out_nz)
    np.testing.assert_allclose(np.asarray(u_vals2), np.asarray(u_ref2),
                               rtol=1e-5, atol=1e-5)
    np.testing.assert_allclose(np.asarray(pos_est2), np.asarray(pos_ref2),
                               rtol=1e-5, atol=1e-5)

    print("KERNEL_OK")
</pallas_src>

<mosaic_0001>
module attributes {stable_mosaic.version = 11 : i64} {
  func.func @pathrnn_kernel(%arg0: memref<2x8x2xf32, #tpu.memory_space<vmem>>, %arg1: memref<2x32xf32, #tpu.memory_space<vmem>>, %arg2: memref<32x32xf32, #tpu.memory_space<vmem>>, %arg3: memref<1x32xf32, #tpu.memory_space<vmem>>, %arg4: memref<32x2xf32, #tpu.memory_space<vmem>>, %arg5: memref<2x8x2xf32, #tpu.memory_space<vmem>>, %arg6: memref<2x8x32xf32, #tpu.memory_space<vmem>>) attributes {dimension_semantics = [], scalar_prefetch = 0 : i64, scratch_operands = 0 : i64, tpu.core_type = #tpu.core_type<tc>} {
    %c0 = arith.constant 0 : index
    %c0_0 = arith.constant 0 : index
    %c0_1 = arith.constant 0 : index
    %0 = vector.load %arg0[%c0, %c0_0, %c0_1] : memref<2x8x2xf32, #tpu.memory_space<vmem>>, vector<2x8x2xf32>
    %c0_2 = arith.constant 0 : index
    %c0_3 = arith.constant 0 : index
    %1 = vector.load %arg1[%c0_2, %c0_3] : memref<2x32xf32, #tpu.memory_space<vmem>>, vector<2x32xf32>
    %c0_4 = arith.constant 0 : index
    %c0_5 = arith.constant 0 : index
    %2 = vector.load %arg2[%c0_4, %c0_5] : memref<32x32xf32, #tpu.memory_space<vmem>>, vector<32x32xf32>
    %c0_6 = arith.constant 0 : index
    %c0_7 = arith.constant 0 : index
    %3 = vector.load %arg3[%c0_6, %c0_7] : memref<1x32xf32, #tpu.memory_space<vmem>>, vector<1x32xf32>
    %c0_8 = arith.constant 0 : index
    %c0_9 = arith.constant 0 : index
    %4 = vector.load %arg4[%c0_8, %c0_9] : memref<32x2xf32, #tpu.memory_space<vmem>>, vector<32x2xf32>
    %5 = vector.extract_strided_slice %0 {offsets = [0, 0, 0], sizes = [2, 8, 1], strides = [1, 1, 1]} : vector<2x8x2xf32> to vector<2x8x1xf32>
    %6 = vector.extract_strided_slice %1 {offsets = [0, 0], sizes = [1, 32], strides = [1, 1]} : vector<2x32xf32> to vector<1x32xf32>
    %7 = vector.shape_cast %6 : vector<1x32xf32> to vector<1x1x32xf32>
    %8 = vector.broadcast %5 : vector<2x8x1xf32> to vector<2x8x32xf32>
    %9 = vector.broadcast %7 : vector<1x1x32xf32> to vector<2x8x32xf32>
    %10 = arith.mulf %8, %9 : vector<2x8x32xf32>
    %11 = vector.extract_strided_slice %0 {offsets = [0, 0, 1], sizes = [2, 8, 1], strides = [1, 1, 1]} : vector<2x8x2xf32> to vector<2x8x1xf32>
    %12 = vector.extract_strided_slice %1 {offsets = [1, 0], sizes = [1, 32], strides = [1, 1]} : vector<2x32xf32> to vector<1x32xf32>
    %13 = vector.shape_cast %12 : vector<1x32xf32> to vector<1x1x32xf32>
    %14 = vector.broadcast %11 : vector<2x8x1xf32> to vector<2x8x32xf32>
    %15 = vector.broadcast %13 : vector<1x1x32xf32> to vector<2x8x32xf32>
    %16 = arith.mulf %14, %15 : vector<2x8x32xf32>
    %17 = arith.addf %10, %16 : vector<2x8x32xf32>
    %18 = vector.shape_cast %3 : vector<1x32xf32> to vector<1x1x32xf32>
    %19 = vector.broadcast %18 : vector<1x1x32xf32> to vector<2x8x32xf32>
    %20 = arith.addf %17, %19 : vector<2x8x32xf32>
    %cst = arith.constant 0.000000e+00 : f32
    %21 = vector.broadcast %cst : f32 to vector<2x32xf32>
    %22 = vector.extract_strided_slice %20 {offsets = [0, 0, 0], sizes = [2, 1, 32], strides = [1, 1, 1]} : vector<2x8x32xf32> to vector<2x1x32xf32>
    %23 = vector.shape_cast %22 : vector<2x1x32xf32> to vector<2x32xf32>
    %cst_10 = arith.constant dense<0.000000e+00> : vector<2x32xf32>
    %24 = tpu.matmul %21, %2, %cst_10 {dimension_numbers = #tpu.dot_dimension_numbers<[1], [0], [0], [1], [0, 0, 1, 1], [], []>} : vector<2x32xf32>, vector<32x32xf32>, vector<2x32xf32> -> vector<2x32xf32>
    %25 = arith.addf %23, %24 : vector<2x32xf32>
    %26 = math.tanh %25 : vector<2x32xf32>
    %c0_11 = arith.constant 0 : index
    %c0_12 = arith.constant 0 : index
    %c0_13 = arith.constant 0 : index
    %27 = vector.load %arg6[%c0_11, %c0_12, %c0_13] : memref<2x8x32xf32, #tpu.memory_space<vmem>>, vector<2x1x32xf32>
    %28 = vector.shape_cast %27 : vector<2x1x32xf32> to vector<2x32xf32>
    %29 = vector.shape_cast %26 : vector<2x32xf32> to vector<2x1x32xf32>
    tpu.vector_store %arg6[%c0_11, %c0_12, %c0_13], %29 {strides = array<i32>} : memref<2x8x32xf32, #tpu.memory_space<vmem>>, vector<2x1x32xf32>,
    %cst_14 = arith.constant dense<0.000000e+00> : vector<2x2xf32>
    %30 = tpu.matmul %26, %4, %cst_14 {dimension_numbers = #tpu.dot_dimension_numbers<[1], [0], [0], [1], [0, 0, 1, 1], [], []>} : vector<2x32xf32>, vector<32x2xf32>, vector<2x2xf32> -> vector<2x2xf32>
    %c0_15 = arith.constant 0 : index
    %c0_16 = arith.constant 0 : index
    %c0_17 = arith.constant 0 : index
    %31 = vector.load %arg5[%c0_15, %c0_16, %c0_17] : memref<2x8x2xf32, #tpu.memory_space<vmem>>, vector<2x1x2xf32>
    %32 = vector.shape_cast %31 : vector<2x1x2xf32> to vector<2x2xf32>
    %33 = vector.shape_cast %30 : vector<2x2xf32> to vector<2x1x2xf32>
    tpu.vector_store %arg5[%c0_15, %c0_16, %c0_17], %33 {strides = array<i32>} : memref<2x8x2xf32, #tpu.memory_space<vmem>>, vector<2x1x2xf32>,
    %34 = vector.extract_strided_slice %20 {offsets = [0, 1, 0], sizes = [2, 1, 32], strides = [1, 1, 1]} : vector<2x8x32xf32> to vector<2x1x32xf32>
    %35 = vector.shape_cast %34 : vector<2x1x32xf32> to vector<2x32xf32>
    %cst_18 = arith.constant dense<0.000000e+00> : vector<2x32xf32>
    %36 = tpu.matmul %26, %2, %cst_18 {dimension_numbers = #tpu.dot_dimension_numbers<[1], [0], [0], [1], [0, 0, 1, 1], [], []>} : vector<2x32xf32>, vector<32x32xf32>, vector<2x32xf32> -> vector<2x32xf32>
    %37 = arith.addf %35, %36 : vector<2x32xf32>
    %38 = math.tanh %37 : vector<2x32xf32>
    %c0_19 = arith.constant 0 : index
    %c1 = arith.constant 1 : index
    %c0_20 = arith.constant 0 : index
    %39 = vector.load %arg6[%c0_19, %c1, %c0_20] : memref<2x8x32xf32, #tpu.memory_space<vmem>>, vector<2x1x32xf32>
    %40 = vector.shape_cast %39 : vector<2x1x32xf32> to vector<2x32xf32>
    %41 = vector.shape_cast %38 : vector<2x32xf32> to vector<2x1x32xf32>
    tpu.vector_store %arg6[%c0_19, %c1, %c0_20], %41 {strides = array<i32>} : memref<2x8x32xf32, #tpu.memory_space<vmem>>, vector<2x1x32xf32>,
    %cst_21 = arith.constant dense<0.000000e+00> : vector<2x2xf32>
    %42 = tpu.matmul %38, %4, %cst_21 {dimension_numbers = #tpu.dot_dimension_numbers<[1], [0], [0], [1], [0, 0, 1, 1], [], []>} : vector<2x32xf32>, vector<32x2xf32>, vector<2x2xf32> -> vector<2x2xf32>
    %c0_22 = arith.constant 0 : index
    %c1_23 = arith.constant 1 : index
    %c0_24 = arith.constant 0 : index
    %43 = vector.load %arg5[%c0_22, %c1_23, %c0_24] : memref<2x8x2xf32, #tpu.memory_space<vmem>>, vector<2x1x2xf32>
    %44 = vector.shape_cast %43 : vector<2x1x2xf32> to vector<2x2xf32>
    %45 = vector.shape_cast %42 : vector<2x2xf32> to vector<2x1x2xf32>
    tpu.vector_store %arg5[%c0_22, %c1_23, %c0_24], %45 {strides = array<i32>} : memref<2x8x2xf32, #tpu.memory_space<vmem>>, vector<2x1x2xf32>,
    %46 = vector.extract_strided_slice %20 {offsets = [0, 2, 0], sizes = [2, 1, 32], strides = [1, 1, 1]} : vector<2x8x32xf32> to vector<2x1x32xf32>
    %47 = vector.shape_cast %46 : vector<2x1x32xf32> to vector<2x32xf32>
    %cst_25 = arith.constant dense<0.000000e+00> : vector<2x32xf32>
    %48 = tpu.matmul %38, %2, %cst_25 {dimension_numbers = #tpu.dot_dimension_numbers<[1], [0], [0], [1], [0, 0, 1, 1], [], []>} : vector<2x32xf32>, vector<32x32xf32>, vector<2x32xf32> -> vector<2x32xf32>
    %49 = arith.addf %47, %48 : vector<2x32xf32>
    %50 = math.tanh %49 : vector<2x32xf32>
    %c0_26 = arith.constant 0 : index
    %c2 = arith.constant 2 : index
    %c0_27 = arith.constant 0 : index
    %51 = vector.load %arg6[%c0_26, %c2, %c0_27] : memref<2x8x32xf32, #tpu.memory_space<vmem>>, vector<2x1x32xf32>
    %52 = vector.shape_cast %51 : vector<2x1x32xf32> to vector<2x32xf32>
    %53 = vector.shape_cast %50 : vector<2x32xf32> to vector<2x1x32xf32>
    tpu.vector_store %arg6[%c0_26, %c2, %c0_27], %53 {strides = array<i32>} : memref<2x8x32xf32, #tpu.memory_space<vmem>>, vector<2x1x32xf32>,
    %cst_28 = arith.constant dense<0.000000e+00> : vector<2x2xf32>
    %54 = tpu.matmul %50, %4, %cst_28 {dimension_numbers = #tpu.dot_dimension_numbers<[1], [0], [0], [1], [0, 0, 1, 1], [], []>} : vector<2x32xf32>, vector<32x2xf32>, vector<2x2xf32> -> vector<2x2xf32>
    %c0_29 = arith.constant 0 : index
    %c2_30 = arith.constant 2 : index
    %c0_31 = arith.constant 0 : index
    %55 = vector.load %arg5[%c0_29, %c2_30, %c0_31] : memref<2x8x2xf32, #tpu.memory_space<vmem>>, vector<2x1x2xf32>
    %56 = vector.shape_cast %55 : vector<2x1x2xf32> to vector<2x2xf32>
    %57 = vector.shape_cast %54 : vector<2x2xf32> to vector<2x1x2xf32>
    tpu.vector_store %arg5[%c0_29, %c2_30, %c0_31], %57 {strides = array<i32>} : memref<2x8x2xf32, #tpu.memory_space<vmem>>, vector<2x1x2xf32>,
    %58 = vector.extract_strided_slice %20 {offsets = [0, 3, 0], sizes = [2, 1, 32], strides = [1, 1, 1]} : vector<2x8x32xf32> to vector<2x1x32xf32>
    %59 = vector.shape_cast %58 : vector<2x1x32xf32> to vector<2x32xf32>
    %cst_32 = arith.constant dense<0.000000e+00> : vector<2x32xf32>
    %60 = tpu.matmul %50, %2, %cst_32 {dimension_numbers = #tpu.dot_dimension_numbers<[1], [0], [0], [1], [0, 0, 1, 1], [], []>} : vector<2x32xf32>, vector<32x32xf32>, vector<2x32xf32> -> vector<2x32xf32>
    %61 = arith.addf %59, %60 : vector<2x32xf32>
    %62 = math.tanh %61 : vector<2x32xf32>
    %c0_33 = arith.constant 0 : index
    %c3 = arith.constant 3 : index
    %c0_34 = arith.constant 0 : index
    %63 = vector.load %arg6[%c0_33, %c3, %c0_34] : memref<2x8x32xf32, #tpu.memory_space<vmem>>, vector<2x1x32xf32>
    %64 = vector.shape_cast %63 : vector<2x1x32xf32> to vector<2x32xf32>
    %65 = vector.shape_cast %62 : vector<2x32xf32> to vector<2x1x32xf32>
    tpu.vector_store %arg6[%c0_33, %c3, %c0_34], %65 {strides = array<i32>} : memref<2x8x32xf32, #tpu.memory_space<vmem>>, vector<2x1x32xf32>,
    %cst_35 = arith.constant dense<0.000000e+00> : vector<2x2xf32>
    %66 = tpu.matmul %62, %4, %cst_35 {dimension_numbers = #tpu.dot_dimension_numbers<[1], [0], [0], [1], [0, 0, 1, 1], [], []>} : vector<2x32xf32>, vector<32x2xf32>, vector<2x2xf32> -> vector<2x2xf32>
    %c0_36 = arith.constant 0 : index
    %c3_37 = arith.constant 3 : index
    %c0_38 = arith.constant 0 : index
    %67 = vector.load %arg5[%c0_36, %c3_37, %c0_38] : memref<2x8x2xf32, #tpu.memory_space<vmem>>, vector<2x1x2xf32>
    %68 = vector.shape_cast %67 : vector<2x1x2xf32> to vector<2x2xf32>
    %69 = vector.shape_cast %66 : vector<2x2xf32> to vector<2x1x2xf32>
    tpu.vector_store %arg5[%c0_36, %c3_37, %c0_38], %69 {strides = array<i32>} : memref<2x8x2xf32, #tpu.memory_space<vmem>>, vector<2x1x2xf32>,
    %70 = vector.extract_strided_slice %20 {offsets = [0, 4, 0], sizes = [2, 1, 32], strides = [1, 1, 1]} : vector<2x8x32xf32> to vector<2x1x32xf32>
    %71 = vector.shape_cast %70 : vector<2x1x32xf32> to vector<2x32xf32>
    %cst_39 = arith.constant dense<0.000000e+00> : vector<2x32xf32>
    %72 = tpu.matmul %62, %2, %cst_39 {dimension_numbers = #tpu.dot_dimension_numbers<[1], [0], [0], [1], [0, 0, 1, 1], [], []>} : vector<2x32xf32>, vector<32x32xf32>, vector<2x32xf32> -> vector<2x32xf32>
    %73 = arith.addf %71, %72 : vector<2x32xf32>
    %74 = math.tanh %73 : vector<2x32xf32>
    %c0_40 = arith.constant 0 : index
    %c4 = arith.constant 4 : index
    %c0_41 = arith.constant 0 : index
    %75 = vector.load %arg6[%c0_40, %c4, %c0_41] : memref<2x8x32xf32, #tpu.memory_space<vmem>>, vector<2x1x32xf32>
    %76 = vector.shape_cast %75 : vector<2x1x32xf32> to vector<2x32xf32>
    %77 = vector.shape_cast %74 : vector<2x32xf32> to vector<2x1x32xf32>
    tpu.vector_store %arg6[%c0_40, %c4, %c0_41], %77 {strides = array<i32>} : memref<2x8x32xf32, #tpu.memory_space<vmem>>, vector<2x1x32xf32>,
    %cst_42 = arith.constant dense<0.000000e+00> : vector<2x2xf32>
    %78 = tpu.matmul %74, %4, %cst_42 {dimension_numbers = #tpu.dot_dimension_numbers<[1], [0], [0], [1], [0, 0, 1, 1], [], []>} : vector<2x32xf32>, vector<32x2xf32>, vector<2x2xf32> -> vector<2x2xf32>
    %c0_43 = arith.constant 0 : index
    %c4_44 = arith.constant 4 : index
    %c0_45 = arith.constant 0 : index
    %79 = vector.load %arg5[%c0_43, %c4_44, %c0_45] : memref<2x8x2xf32, #tpu.memory_space<vmem>>, vector<2x1x2xf32>
    %80 = vector.shape_cast %79 : vector<2x1x2xf32> to vector<2x2xf32>
    %81 = vector.shape_cast %78 : vector<2x2xf32> to vector<2x1x2xf32>
    tpu.vector_store %arg5[%c0_43, %c4_44, %c0_45], %81 {strides = array<i32>} : memref<2x8x2xf32, #tpu.memory_space<vmem>>, vector<2x1x2xf32>,
    %82 = vector.extract_strided_slice %20 {offsets = [0, 5, 0], sizes = [2, 1, 32], strides = [1, 1, 1]} : vector<2x8x32xf32> to vector<2x1x32xf32>
    %83 = vector.shape_cast %82 : vector<2x1x32xf32> to vector<2x32xf32>
    %cst_46 = arith.constant dense<0.000000e+00> : vector<2x32xf32>
    %84 = tpu.matmul %74, %2, %cst_46 {dimension_numbers = #tpu.dot_dimension_numbers<[1], [0], [0], [1], [0, 0, 1, 1], [], []>} : vector<2x32xf32>, vector<32x32xf32>, vector<2x32xf32> -> vector<2x32xf32>
    %85 = arith.addf %83, %84 : vector<2x32xf32>
    %86 = math.tanh %85 : vector<2x32xf32>
    %c0_47 = arith.constant 0 : index
    %c5 = arith.constant 5 : index
    %c0_48 = arith.constant 0 : index
    %87 = vector.load %arg6[%c0_47, %c5, %c0_48] : memref<2x8x32xf32, #tpu.memory_space<vmem>>, vector<2x1x32xf32>
    %88 = vector.shape_cast %87 : vector<2x1x32xf32> to vector<2x32xf32>
    %89 = vector.shape_cast %86 : vector<2x32xf32> to vector<2x1x32xf32>
    tpu.vector_store %arg6[%c0_47, %c5, %c0_48], %89 {strides = array<i32>} : memref<2x8x32xf32, #tpu.memory_space<vmem>>, vector<2x1x32xf32>,
    %cst_49 = arith.constant dense<0.000000e+00> : vector<2x2xf32>
    %90 = tpu.matmul %86, %4, %cst_49 {dimension_numbers = #tpu.dot_dimension_numbers<[1], [0], [0], [1], [0, 0, 1, 1], [], []>} : vector<2x32xf32>, vector<32x2xf32>, vector<2x2xf32> -> vector<2x2xf32>
    %c0_50 = arith.constant 0 : index
    %c5_51 = arith.constant 5 : index
    %c0_52 = arith.constant 0 : index
    %91 = vector.load %arg5[%c0_50, %c5_51, %c0_52] : memref<2x8x2xf32, #tpu.memory_space<vmem>>, vector<2x1x2xf32>
    %92 = vector.shape_cast %91 : vector<2x1x2xf32> to vector<2x2xf32>
    %93 = vector.shape_cast %90 : vector<2x2xf32> to vector<2x1x2xf32>
    tpu.vector_store %arg5[%c0_50, %c5_51, %c0_52], %93 {strides = array<i32>} : memref<2x8x2xf32, #tpu.memory_space<vmem>>, vector<2x1x2xf32>,
    %94 = vector.extract_strided_slice %20 {offsets = [0, 6, 0], sizes = [2, 1, 32], strides = [1, 1, 1]} : vector<2x8x32xf32> to vector<2x1x32xf32>
    %95 = vector.shape_cast %94 : vector<2x1x32xf32> to vector<2x32xf32>
    %cst_53 = arith.constant dense<0.000000e+00> : vector<2x32xf32>
    %96 = tpu.matmul %86, %2, %cst_53 {dimension_numbers = #tpu.dot_dimension_numbers<[1], [0], [0], [1], [0, 0, 1, 1], [], []>} : vector<2x32xf32>, vector<32x32xf32>, vector<2x32xf32> -> vector<2x32xf32>
    %97 = arith.addf %95, %96 : vector<2x32xf32>
    %98 = math.tanh %97 : vector<2x32xf32>
    %c0_54 = arith.constant 0 : index
    %c6 = arith.constant 6 : index
    %c0_55 = arith.constant 0 : index
    %99 = vector.load %arg6[%c0_54, %c6, %c0_55] : memref<2x8x32xf32, #tpu.memory_space<vmem>>, vector<2x1x32xf32>
    %100 = vector.shape_cast %99 : vector<2x1x32xf32> to vector<2x32xf32>
    %101 = vector.shape_cast %98 : vector<2x32xf32> to vector<2x1x32xf32>
    tpu.vector_store %arg6[%c0_54, %c6, %c0_55], %101 {strides = array<i32>} : memref<2x8x32xf32, #tpu.memory_space<vmem>>, vector<2x1x32xf32>,
    %cst_56 = arith.constant dense<0.000000e+00> : vector<2x2xf32>
    %102 = tpu.matmul %98, %4, %cst_56 {dimension_numbers = #tpu.dot_dimension_numbers<[1], [0], [0], [1], [0, 0, 1, 1], [], []>} : vector<2x32xf32>, vector<32x2xf32>, vector<2x2xf32> -> vector<2x2xf32>
    %c0_57 = arith.constant 0 : index
    %c6_58 = arith.constant 6 : index
    %c0_59 = arith.constant 0 : index
    %103 = vector.load %arg5[%c0_57, %c6_58, %c0_59] : memref<2x8x2xf32, #tpu.memory_space<vmem>>, vector<2x1x2xf32>
    %104 = vector.shape_cast %103 : vector<2x1x2xf32> to vector<2x2xf32>
    %105 = vector.shape_cast %102 : vector<2x2xf32> to vector<2x1x2xf32>
    tpu.vector_store %arg5[%c0_57, %c6_58, %c0_59], %105 {strides = array<i32>} : memref<2x8x2xf32, #tpu.memory_space<vmem>>, vector<2x1x2xf32>,
    %106 = vector.extract_strided_slice %20 {offsets = [0, 7, 0], sizes = [2, 1, 32], strides = [1, 1, 1]} : vector<2x8x32xf32> to vector<2x1x32xf32>
    %107 = vector.shape_cast %106 : vector<2x1x32xf32> to vector<2x32xf32>
    %cst_60 = arith.constant dense<0.000000e+00> : vector<2x32xf32>
    %108 = tpu.matmul %98, %2, %cst_60 {dimension_numbers = #tpu.dot_dimension_numbers<[1], [0], [0], [1], [0, 0, 1, 1], [], []>} : vector<2x32xf32>, vector<32x32xf32>, vector<2x32xf32> -> vector<2x32xf32>
    %109 = arith.addf %107, %108 : vector<2x32xf32>
    %110 = math.tanh %109 : vector<2x32xf32>
    %c0_61 = arith.constant 0 : index
    %c7 = arith.constant 7 : index
    %c0_62 = arith.constant 0 : index
    %111 = vector.load %arg6[%c0_61, %c7, %c0_62] : memref<2x8x32xf32, #tpu.memory_space<vmem>>, vector<2x1x32xf32>
    %112 = vector.shape_cast %111 : vector<2x1x32xf32> to vector<2x32xf32>
    %113 = vector.shape_cast %110 : vector<2x32xf32> to vector<2x1x32xf32>
    tpu.vector_store %arg6[%c0_61, %c7, %c0_62], %113 {strides = array<i32>} : memref<2x8x32xf32, #tpu.memory_space<vmem>>, vector<2x1x32xf32>,
    %cst_63 = arith.constant dense<0.000000e+00> : vector<2x2xf32>
    %114 = tpu.matmul %110, %4, %cst_63 {dimension_numbers = #tpu.dot_dimension_numbers<[1], [0], [0], [1], [0, 0, 1, 1], [], []>} : vector<2x32xf32>, vector<32x2xf32>, vector<2x2xf32> -> vector<2x2xf32>
    %c0_64 = arith.constant 0 : index
    %c7_65 = arith.constant 7 : index
    %c0_66 = arith.constant 0 : index
    %115 = vector.load %arg5[%c0_64, %c7_65, %c0_66] : memref<2x8x2xf32, #tpu.memory_space<vmem>>, vector<2x1x2xf32>
    %116 = vector.shape_cast %115 : vector<2x1x2xf32> to vector<2x2xf32>
    %117 = vector.shape_cast %114 : vector<2x2xf32> to vector<2x1x2xf32>
    tpu.vector_store %arg5[%c0_64, %c7_65, %c0_66], %117 {strides = array<i32>} : memref<2x8x2xf32, #tpu.memory_space<vmem>>, vector<2x1x2xf32>,
    return
  }
}

</mosaic_0001>

<bundles_post_ra>
// kernel: pathrnn_forward.1
= control target key start
LH: loop header
LB: loop body
LE: loop exit
PB: predicated region body
PF: predicated region fallthrough
CT: control target
= control target key end

     0   :  { %v2022_v3 = vmov 0.0|0.0   ;;  %vm2023_vm0 = vmmov 0   ;;  %v2024_v6 = vmov 0.0   ;;  %v2025_v9 = vmov 0   ;;  %s2352_s0 = inlined_call_operand.vmem [shape: f32[2,8,2], index: 0, kind: input, shape index: {}]   ;;  %s2353_s1 = inlined_call_operand.vmem [shape: f32[2,32], index: 1, kind: input, shape index: {}]   ;;  %s2354_s2 = inlined_call_operand.vmem [shape: f32[32,32], index: 2, kind: input, shape index: {}]   ;;  %s2355_s3 = inlined_call_operand.vmem [shape: f32[1,32], index: 3, kind: input, shape index: {}]   ;;  %s2356_s4 = inlined_call_operand.vmem [shape: f32[32,2], index: 4, kind: input, shape index: {}]   ;;  %s2357_s5 = inlined_call_operand.vmem [shape: f32[2,8,2], index: 5, kind: output, shape index: {0}]   ;;  %s2358_s6 = inlined_call_operand.hbm [shape: f32[2,8,32], index: 6, kind: output, shape index: {1}]  }
   0x1   :  { %v26_v0 = vld [vmem:[%s2354_s2] sm:$0xff]  ;;  %v27_v1 = vld [vmem:[%s2354_s2 + $0x8] sm:$0xff]  ;;  %v28_v2 = vld [vmem:[%s2354_s2 + $0x10] sm:$0xff]  ;;  %1857 = vmatprep.subr.bf16.mxu0 %v2022_v3  ;;  %1689 = vmatprep.mubr.msk.f32.mxu0 %vm2023_vm0, %v2024_v6 }
   0x2   :  { %v2076_v4 = vpack.c.bf16 %v27_v1, %v26_v0  ;;  %v29_v5 = vld [vmem:[%s2354_s2 + $0x18] sm:$0xff]  ;;  %v24_v7 = vld [vmem:[%s2352_s0 + $0x8] sm:$0xff]  ;;  %v23_v8 = vld [vmem:[%s2352_s0] sm:$0xff]  ;;  %1962 = vset.pattern.permute.xlu0 %v2025_v9  ;;  %1964 = vset.pattern.permute.xlu1 %v2025_v9 }
   0x3   :  { %v2090_v10 = vpack.c.bf16 %v29_v5, %v28_v2  ;;  %42 = vperm.xlu0 %1962, %v24_v7  }
   0x4   :  { %1859 = vmatpush3.bf16.msra.mxu0 %v2076_v4 }
   0x5   :  { %12 = vsyncpa [#allocation3], 0  ;;  %1860 = vmatprep.subr.bf16.mxu0 %v2022_v3  ;;  %37 = vperm.xlu1 %1964, %v23_v8   ;;  %v2026_v11 = vmov 1   ;;  %v31_v12 = vld [vmem:[%s2356_s4] sm:$0xff]  ;;  %v32_v13 = vld [vmem:[%s2356_s4 + $0x8] sm:$0xff]  ;;  %v45_v18 = vlaneseq  ;;  %vm157_vm1 = vcmask 253952  }
   0x6   :  { %1863 = vmatprep.subr.bf16.mxu1 %v2022_v3  ;;  %1700 = vmatprep.mubr.msk.f32.mxu1 %vm2023_vm0, %v2024_v6  ;;  %v2111_v14 = vpack.c.bf16 %v32_v13, %v31_v12  ;;  %v33_v15 = vld [vmem:[%s2356_s4 + $0x10] sm:$0xff]  ;;  %v34_v16 = vld [vmem:[%s2356_s4 + $0x18] sm:$0xff]  ;;  %v25_v23 = vld [vmem:[%s2353_s1] sm:$0x3]  ;;  %vm163_vm2 = vcmask 1041409   ;;  %vm75_vm3 = vcmask 261120  }
   0x7   :  { %1963 = vset.pattern.permute.xlu0 %v2026_v11  ;;  %v2121_v17 = vpack.c.bf16 %v34_v16, %v33_v15  ;;  %v46_v19 = vshrl.u32 %v45_v18, 7  ;;  %v1585_v34 = vld [vmem:[%s2355_s3] ss:$0 sm:$0xff]  ;;  %v2027_v47 = vmov 1966171168   ;;  %vm262_vm4 = vcmask 8192  }
   0x8   :  { %1862 = vmatpush3.bf16.msra.mxu0 %v2090_v10  ;;  %56 = vperm.xlu0 %1963, %v24_v7   ;;  %v239_v48 = vunpack.c.l.s4 %v2027_v47  ;;  %vm343_vm5 = vcmask 254977   ;;  %vm528_vm6 = vcmask 256002   ;;  %vm714_vm7 = vcmask 257027   ;;  %s2028_s17 = smov [#allocation2]  }
   0x9   :  { %1965 = vset.pattern.permute.xlu1 %v2026_v11  ;;  %1869 = vmatprep.subr.bf16.mxu0 %v2022_v3  ;;  %v47_v21 = vsub.s32 0, %v46_v19  ;;  %v61_v22 = vsub.s32 1, %v46_v19  ;;  %vm900_vm8 = vcmask 258052   ;;  %vm1086_vm9 = vcmask 259077   ;;  %s1572_s1 = sshll.u32 %s2028_s17, 4  ;;  %s1573_s1 = int_to_ptr.vmem [resolvable:$true] %s1572_s1 }
   0xa   :  { %52 = vperm.xlu1 %1965, %v23_v8   ;;  %1865 = vmatpush3.bf16.msra.mxu1 %v2111_v14  ;;  %v240_v49 = vunpack.c.0.s8 %v239_v48  ;;  %vm1272_vm10 = vcmask 260102   ;;  %vm1458_vm11 = vcmask 261127   ;;  %s1998_s3 = scalar_lea.vmem %s1573_s1, 256  ;;  %p2003_p1 = scmp.lt.s32.totalorder %s1573_s1, %s1573_s1 }
   0xb   :  { %1690 = vmatmul.mubr.f32.vlgmr.msra.gmra.mrb[0].mxu0 %v2024_v6  ;;  %1866 = vmatprep.subr.bf16.mxu1 %v2022_v3  ;;  %v48_v26 = vrot.slane %v25_v23, %v47_v21  ;;  %v62_v27 = vrot.slane %v25_v23, %v61_v22  ;;  %p1999_p0 = scmp.ne.s32.totalorder %s1573_s1, %s1998_s3  ;;  %p2004_p2 = scmp.lt.s32.totalorder %s1998_s3, %s1998_s3 }
   0xc   :  { %1871 = vmatpush3.bf16.msra.mxu0 %v2076_v4  ;;  %1711 = vmatprep.mubr.msk.f32.mxu0 %vm2023_vm0, %v2024_v6  ;;  %v2152_v50 = vsub.s32 %v240_v49, %v46_v19 }
   0xd   :  { %1872 = vmatprep.subr.bf16.mxu0 %v2022_v3  ;;  %p2005_p3 = por %p2004_p2, %p2003_p1 }
   0xe   :  { %1868 = vmatpush3.bf16.msra.mxu1 %v2121_v17 }
   0xf   :  { %1875 = vmatprep.subr.bf16.mxu1 %v2022_v3  ;;  %p2006_p4 = pnand %p2005_p3, %p1999_p0 }
  0x10   :  { %1874 = vmatpush3.bf16.msra.mxu0 %v2090_v10 }
  0x11   :  { %1881 = vmatprep.subr.bf16.mxu0 %v2022_v3 }
  0x82   :  { %v43_v24 = vpop.permute.xlu0 %42 }
  0x83   :  { %v50_v31 = vmul.f32 %v48_v26, %v43_v24 }
  0x84   :  { %v38_v20 = vpop.permute.xlu1 %37 }
  0x85   :  { %v49_v28 = vmul.f32 %v48_v26, %v38_v20 }
  0x87   :  { %v57_v30 = vpop.permute.xlu0 %56 }
  0x88   :  { %v64_v32 = vmul.f32 %v62_v27, %v57_v30 }
  0x89   :  { %v53_v25 = vpop.permute.xlu1 %52 }
  0x8a   :  { %v63_v29 = vmul.f32 %v62_v27, %v53_v25  ;;  %v66_v35 = vadd.f32 %v64_v32, %v50_v31 }
  0x8c   :  { %v65_v33 = vadd.f32 %v63_v29, %v49_v28  ;;  %v2133_v38 = vadd.f32 %v1585_v34, %v66_v35 }
  0x8e   :  { %v2131_v36 = vadd.f32 %v1585_v34, %v65_v33 }
  0xde   :  { %v145_v37 = vpop.f32.mrb[0].mxu0 }
  0xdf   :  { %v150_v39 = vrot.slane %v145_v37, 1  ;;  %v153_v40 = vadd.f32 %v145_v37, %v2131_v36  ;;  %v1691_v41 = vpop.f32.mrb[1].mxu0 }
  0xe1   :  { %v154_v42 = vadd.f32 %v150_v39, %v2133_v38  ;;  %1966 = vtanh.f32 %v153_v40 }
  0xe3   :  { %1968 = vtanh.f32 %v154_v42 }
  0xeb   :  { %v1967_v43 = vpop.eup %1966 }
  0xec   :  { %158 = vst.msk [vmem:[#allocation2] sm:$0x1] %vm157_vm1, %v1967_v43 }
  0xed   :  { %v1969_v44 = vpop.eup %1968 }
  0xee   :  { %159 = vst.msk [vmem:[#allocation2 + $0x8] sm:$0x1] %vm157_vm1, %v1969_v44  ;;  %v162_v45 = vrot.slane %v1969_v44, 7 }
  0xf0   :  { %v164_v46 = vsel %vm163_vm2, %v162_v45, %v1967_v43 }
  0xf1   :  { %1701 = vmatmul.mubr.msk.f32.vlgmr.msra.gmra.mrb[0].mxu1 %vm75_vm3, %v164_v46  ;;  %1712 = vmatmul.mubr.msk.f32.vlgmr.msra.gmra.mrb[2].mxu0 %vm75_vm3, %v164_v46 }
  0xf2   :  { %1877 = vmatpush3.bf16.msra.mxu1 %v2111_v14  ;;  %1883 = vmatpush3.bf16.msra.mxu0 %v2076_v4 }
  0xf3   :  { %1878 = vmatprep.subr.bf16.mxu1 %v2022_v3  ;;  %1884 = vmatprep.subr.bf16.mxu0 %v2022_v3 }
  0xf4   :  { %1722 = vmatprep.mubr.msk.f32.mxu1 %vm2023_vm0, %v2024_v6  ;;  %1733 = vmatprep.mubr.msk.f32.mxu0 %vm2023_vm0, %v2024_v6 }
  0xf6   :  { %1880 = vmatpush3.bf16.msra.mxu1 %v2121_v17  ;;  %1886 = vmatpush3.bf16.msra.mxu0 %v2090_v10 }
  0xf7   :  { %1887 = vmatprep.subr.bf16.mxu1 %v2022_v3  ;;  %1893 = vmatprep.subr.bf16.mxu0 %v2022_v3 }
 0x1c4   :  { %v233_v51 = vpop.f32.mrb[0].mxu1  ;;  %v331_v52 = vpop.f32.mrb[2].mxu0 }
 0x1c5   :  { %v244_v53 = vrot.slane %v233_v51, %v2152_v50  ;;  %v336_v54 = vrot.slane %v331_v52, 7  ;;  %v340_v55 = vadd.f32 %v331_v52, %v2133_v38  ;;  %v1702_v56 = vpop.f32.mrb[1].mxu1  ;;  %v1713_v57 = vpop.f32.mrb[3].mxu0 }
 0x1c7   :  { %v245_v58 = vcombine.high %v244_v53, %v244_v53  ;;  %v252_v59 = vrot.slane %v244_v53, %v2152_v50  ;;  %v339_v60 = vadd.f32 %v336_v54, %v2131_v36  ;;  %1970 = vtanh.f32 %v340_v55 }
 0x1c9   :  { %v259_v61 = vrot.slane %v245_v58, %v2152_v50  ;;  %263 = vst.msk [vmem:[%s2357_s5] sm:$0x1] %vm262_vm4, %v252_v59  ;;  %1972 = vtanh.f32 %v339_v60 }
 0x1cb   :  { %264 = vst.msk [vmem:[%s2357_s5 + $0x8] sm:$0x1] %vm262_vm4, %v259_v61 }
 0x1d1   :  { %v1971_v62 = vpop.eup %1970 }
 0x1d2   :  { %345 = vst.msk [vmem:[#allocation2 + $0x8] sm:$0x2] %vm343_vm5, %v1971_v62 }
 0x1d3   :  { %v1973_v63 = vpop.eup %1972 }
 0x1d4   :  { %344 = vst.msk [vmem:[#allocation2] sm:$0x2] %vm343_vm5, %v1973_v63  ;;  %v348_v0 = vrot.slane %v1973_v63, 1 }
 0x1d6   :  { %v349_v1 = vsel %vm163_vm2, %v1971_v62, %v348_v0 }
 0x1d7   :  { %1723 = vmatmul.mubr.msk.f32.vlgmr.msra.gmra.mrb[2].mxu1 %vm75_vm3, %v349_v1  ;;  %1734 = vmatmul.mubr.msk.f32.vlgmr.msra.gmra.mrb[4].mxu0 %vm75_vm3, %v349_v1 }
 0x1d8   :  { %1889 = vmatpush3.bf16.msra.mxu1 %v2111_v14  ;;  %1895 = vmatpush3.bf16.msra.mxu0 %v2076_v4 }
 0x1d9   :  { %1890 = vmatprep.subr.bf16.mxu1 %v2022_v3  ;;  %1896 = vmatprep.subr.bf16.mxu0 %v2022_v3 }
 0x1da   :  { %1744 = vmatprep.mubr.msk.f32.mxu1 %vm2023_vm0, %v2024_v6  ;;  %1755 = vmatprep.mubr.msk.f32.mxu0 %vm2023_vm0, %v2024_v6 }
 0x1dc   :  { %1892 = vmatpush3.bf16.msra.mxu1 %v2121_v17  ;;  %1898 = vmatpush3.bf16.msra.mxu0 %v2090_v10 }
 0x1dd   :  { %1899 = vmatprep.subr.bf16.mxu1 %v2022_v3  ;;  %1905 = vmatprep.subr.bf16.mxu0 %v2022_v3 }
 0x2aa   :  { %v418_v2 = vpop.f32.mrb[2].mxu1  ;;  %v515_v5 = vpop.f32.mrb[4].mxu0 }
 0x2ab   :  { %v429_v7 = vrot.slane %v418_v2, %v2152_v50  ;;  %v520_v8 = vrot.slane %v515_v5, 6  ;;  %v521_v9 = vrot.slane %v515_v5, 7  ;;  %v1724_v11 = vpop.f32.mrb[3].mxu1  ;;  %v1735_v12 = vpop.f32.mrb[5].mxu0 }
 0x2ad   :  { %v430_v13 = vcombine.high %v429_v7, %v429_v7  ;;  %v437_v15 = vrot.slane %v429_v7, %v2152_v50  ;;  %v524_v16 = vadd.f32 %v520_v8, %v2131_v36  ;;  %v525_v18 = vadd.f32 %v521_v9, %v2133_v38 }
 0x2af   :  { %v444_v19 = vrot.slane %v430_v13, %v2152_v50  ;;  %447 = vst.msk [vmem:[%s2357_s5 + $0x1] sm:$0x1] %vm262_vm4, %v437_v15  ;;  %1974 = vtanh.f32 %v524_v16 }
 0x2b0   :  { %1976 = vtanh.f32 %v525_v18 }
 0x2b1   :  { %448 = vst.msk [vmem:[%s2357_s5 + $0x9] sm:$0x1] %vm262_vm4, %v444_v19 }
 0x2b9   :  { %v1975_v20 = vpop.eup %1974 }
 0x2ba   :  { %v1977_v21 = vpop.eup %1976  ;;  %529 = vst.msk [vmem:[#allocation2] sm:$0x4] %vm528_vm6, %v1975_v20  ;;  %v533_v22 = vrot.slane %v1975_v20, 2 }
 0x2bb   :  { %530 = vst.msk [vmem:[#allocation2 + $0x8] sm:$0x4] %vm528_vm6, %v1977_v21  ;;  %v534_v23 = vrot.slane %v1977_v21, 1 }
 0x2bd   :  { %v535_v24 = vsel %vm163_vm2, %v534_v23, %v533_v22 }
 0x2be   :  { %1745 = vmatmul.mubr.msk.f32.vlgmr.msra.gmra.mrb[4].mxu1 %vm75_vm3, %v535_v24  ;;  %1756 = vmatmul.mubr.msk.f32.vlgmr.msra.gmra.mrb[6].mxu0 %vm75_vm3, %v535_v24 }
 0x2bf   :  { %1901 = vmatpush3.bf16.msra.mxu1 %v2111_v14  ;;  %1907 = vmatpush3.bf16.msra.mxu0 %v2076_v4 }
 0x2c0   :  { %1902 = vmatprep.subr.bf16.mxu1 %v2022_v3  ;;  %1908 = vmatprep.subr.bf16.mxu0 %v2022_v3 }
 0x2c1   :  { %1766 = vmatprep.mubr.msk.f32.mxu1 %vm2023_vm0, %v2024_v6  ;;  %1777 = vmatprep.mubr.msk.f32.mxu0 %vm2023_vm0, %v2024_v6 }
 0x2c3   :  { %1904 = vmatpush3.bf16.msra.mxu1 %v2121_v17  ;;  %1910 = vmatpush3.bf16.msra.mxu0 %v2090_v10 }
 0x2c4   :  { %1911 = vmatprep.subr.bf16.mxu1 %v2022_v3  ;;  %1917 = vmatprep.subr.bf16.mxu0 %v2022_v3 }
 0x391   :  { %v604_v25 = vpop.f32.mrb[4].mxu1  ;;  %v701_v26 = vpop.f32.mrb[6].mxu0 }
 0x392   :  { %v615_v27 = vrot.slane %v604_v25, %v2152_v50  ;;  %v706_v28 = vrot.slane %v701_v26, 5  ;;  %v707_v29 = vrot.slane %v701_v26, 6  ;;  %v1746_v30 = vpop.f32.mrb[5].mxu1  ;;  %v1757_v31 = vpop.f32.mrb[7].mxu0 }
 0x394   :  { %v616_v32 = vcombine.high %v615_v27, %v615_v27  ;;  %v623_v33 = vrot.slane %v615_v27, %v2152_v50  ;;  %v710_v34 = vadd.f32 %v706_v28, %v2131_v36  ;;  %v711_v35 = vadd.f32 %v707_v29, %v2133_v38 }
 0x396   :  { %v630_v37 = vrot.slane %v616_v32, %v2152_v50  ;;  %633 = vst.msk [vmem:[%s2357_s5 + $0x2] sm:$0x1] %vm262_vm4, %v623_v33  ;;  %1978 = vtanh.f32 %v710_v34 }
 0x397   :  { %1980 = vtanh.f32 %v711_v35 }
 0x398   :  { %634 = vst.msk [vmem:[%s2357_s5 + $0xa] sm:$0x1] %vm262_vm4, %v630_v37 }
 0x3a0   :  { %v1979_v39 = vpop.eup %1978 }
 0x3a1   :  { %v1981_v40 = vpop.eup %1980  ;;  %715 = vst.msk [vmem:[#allocation2] sm:$0x8] %vm714_vm7, %v1979_v39  ;;  %v719_v41 = vrot.slane %v1979_v39, 3 }
 0x3a2   :  { %716 = vst.msk [vmem:[#allocation2 + $0x8] sm:$0x8] %vm714_vm7, %v1981_v40  ;;  %v720_v42 = vrot.slane %v1981_v40, 2 }
 0x3a4   :  { %v721_v43 = vsel %vm163_vm2, %v720_v42, %v719_v41 }
 0x3a5   :  { %1767 = vmatmul.mubr.msk.f32.vlgmr.msra.gmra.mrb[6].mxu1 %vm75_vm3, %v721_v43  ;;  %1778 = vmatmul.mubr.msk.f32.vlgmr.msra.gmra.mrb[8].mxu0 %vm75_vm3, %v721_v43 }
 0x3a6   :  { %1913 = vmatpush3.bf16.msra.mxu1 %v2111_v14  ;;  %1919 = vmatpush3.bf16.msra.mxu0 %v2076_v4 }
 0x3a7   :  { %1914 = vmatprep.subr.bf16.mxu1 %v2022_v3  ;;  %1920 = vmatprep.subr.bf16.mxu0 %v2022_v3 }
 0x3a8   :  { %1788 = vmatprep.mubr.msk.f32.mxu1 %vm2023_vm0, %v2024_v6  ;;  %1799 = vmatprep.mubr.msk.f32.mxu0 %vm2023_vm0, %v2024_v6 }
 0x3aa   :  { %1916 = vmatpush3.bf16.msra.mxu1 %v2121_v17  ;;  %1922 = vmatpush3.bf16.msra.mxu0 %v2090_v10 }
 0x3ab   :  { %1923 = vmatprep.subr.bf16.mxu1 %v2022_v3  ;;  %1929 = vmatprep.subr.bf16.mxu0 %v2022_v3 }
 0x478   :  { %v790_v44 = vpop.f32.mrb[6].mxu1  ;;  %v887_v45 = vpop.f32.mrb[8].mxu0 }
 0x479   :  { %v801_v46 = vrot.slane %v790_v44, %v2152_v50  ;;  %v892_v47 = vrot.slane %v887_v45, 4  ;;  %v893_v48 = vrot.slane %v887_v45, 5  ;;  %v1768_v49 = vpop.f32.mrb[7].mxu1  ;;  %v1779_v51 = vpop.f32.mrb[9].mxu0 }
 0x47b   :  { %v802_v52 = vcombine.high %v801_v46, %v801_v46  ;;  %v809_v53 = vrot.slane %v801_v46, %v2152_v50  ;;  %v896_v54 = vadd.f32 %v892_v47, %v2131_v36  ;;  %v897_v55 = vadd.f32 %v893_v48, %v2133_v38 }
 0x47d   :  { %v816_v56 = vrot.slane %v802_v52, %v2152_v50  ;;  %819 = vst.msk [vmem:[%s2357_s5 + $0x3] sm:$0x1] %vm262_vm4, %v809_v53  ;;  %1982 = vtanh.f32 %v896_v54 }
 0x47e   :  { %1984 = vtanh.f32 %v897_v55 }
 0x47f   :  { %820 = vst.msk [vmem:[%s2357_s5 + $0xb] sm:$0x1] %vm262_vm4, %v816_v56 }
 0x487   :  { %v1983_v57 = vpop.eup %1982 }
 0x488   :  { %v1985_v58 = vpop.eup %1984  ;;  %901 = vst.msk [vmem:[#allocation2] sm:$0x10] %vm900_vm8, %v1983_v57  ;;  %v905_v59 = vrot.slane %v1983_v57, 4 }
 0x489   :  { %902 = vst.msk [vmem:[#allocation2 + $0x8] sm:$0x10] %vm900_vm8, %v1985_v58  ;;  %v906_v60 = vrot.slane %v1985_v58, 3 }
 0x48b   :  { %v907_v61 = vsel %vm163_vm2, %v906_v60, %v905_v59 }
 0x48c   :  { %1789 = vmatmul.mubr.msk.f32.vlgmr.msra.gmra.mrb[8].mxu1 %vm75_vm3, %v907_v61  ;;  %1800 = vmatmul.mubr.msk.f32.vlgmr.msra.gmra.mrb[10].mxu0 %vm75_vm3, %v907_v61 }
 0x48d   :  { %1925 = vmatpush3.bf16.msra.mxu1 %v2111_v14  ;;  %1931 = vmatpush3.bf16.msra.mxu0 %v2076_v4 }
 0x48e   :  { %1926 = vmatprep.subr.bf16.mxu1 %v2022_v3  ;;  %1932 = vmatprep.subr.bf16.mxu0 %v2022_v3 }
 0x48f   :  { %1810 = vmatprep.mubr.msk.f32.mxu1 %vm2023_vm0, %v2024_v6  ;;  %1821 = vmatprep.mubr.msk.f32.mxu0 %vm2023_vm0, %v2024_v6 }
 0x491   :  { %1928 = vmatpush3.bf16.msra.mxu1 %v2121_v17  ;;  %1934 = vmatpush3.bf16.msra.mxu0 %v2090_v10 }
 0x492   :  { %1935 = vmatprep.subr.bf16.mxu1 %v2022_v3  ;;  %1941 = vmatprep.subr.bf16.mxu0 %v2022_v3 }
 0x55f   :  { %v976_v62 = vpop.f32.mrb[8].mxu1  ;;  %v1073_v63 = vpop.f32.mrb[10].mxu0 }
 0x560   :  { %v987_v0 = vrot.slane %v976_v62, %v2152_v50  ;;  %v1078_v1 = vrot.slane %v1073_v63, 3  ;;  %v1079_v2 = vrot.slane %v1073_v63, 4  ;;  %v1790_v5 = vpop.f32.mrb[9].mxu1  ;;  %v1801_v7 = vpop.f32.mrb[11].mxu0 }
 0x562   :  { %v988_v8 = vcombine.high %v987_v0, %v987_v0  ;;  %v995_v9 = vrot.slane %v987_v0, %v2152_v50  ;;  %v1082_v11 = vadd.f32 %v1078_v1, %v2131_v36  ;;  %v1083_v12 = vadd.f32 %v1079_v2, %v2133_v38 }
 0x564   :  { %v1002_v13 = vrot.slane %v988_v8, %v2152_v50  ;;  %1005 = vst.msk [vmem:[%s2357_s5 + $0x4] sm:$0x1] %vm262_vm4, %v995_v9  ;;  %1986 = vtanh.f32 %v1082_v11 }
 0x565   :  { %1988 = vtanh.f32 %v1083_v12 }
 0x566   :  { %1006 = vst.msk [vmem:[%s2357_s5 + $0xc] sm:$0x1] %vm262_vm4, %v1002_v13 }
 0x56e   :  { %v1987_v15 = vpop.eup %1986 }
 0x56f   :  { %v1989_v16 = vpop.eup %1988  ;;  %1087 = vst.msk [vmem:[#allocation2] sm:$0x20] %vm1086_vm9, %v1987_v15  ;;  %v1091_v18 = vrot.slane %v1987_v15, 5 }
 0x570   :  { %1088 = vst.msk [vmem:[#allocation2 + $0x8] sm:$0x20] %vm1086_vm9, %v1989_v16  ;;  %v1092_v19 = vrot.slane %v1989_v16, 4 }
 0x572   :  { %v1093_v20 = vsel %vm163_vm2, %v1092_v19, %v1091_v18 }
 0x573   :  { %1811 = vmatmul.mubr.msk.f32.vlgmr.msra.gmra.mrb[10].mxu1 %vm75_vm3, %v1093_v20  ;;  %1822 = vmatmul.mubr.msk.f32.vlgmr.msra.gmra.mrb[12].mxu0 %vm75_vm3, %v1093_v20 }
 0x574   :  { %1937 = vmatpush3.bf16.msra.mxu1 %v2111_v14  ;;  %1943 = vmatpush3.bf16.msra.mxu0 %v2076_v4 }
 0x575   :  { %1938 = vmatprep.subr.bf16.mxu1 %v2022_v3  ;;  %1944 = vmatprep.subr.bf16.mxu0 %v2022_v3 }
 0x576   :  { %1832 = vmatprep.mubr.msk.f32.mxu1 %vm2023_vm0, %v2024_v6  ;;  %1843 = vmatprep.mubr.msk.f32.mxu0 %vm2023_vm0, %v2024_v6 }
 0x578   :  { %1940 = vmatpush3.bf16.msra.mxu1 %v2121_v17  ;;  %1946 = vmatpush3.bf16.msra.mxu0 %v2090_v10 }
 0x579   :  { %1947 = vmatprep.subr.bf16.mxu1 %v2022_v3 }
 0x646   :  { %v1162_v21 = vpop.f32.mrb[10].mxu1  ;;  %v1259_v22 = vpop.f32.mrb[12].mxu0 }
 0x647   :  { %v1173_v4 = vrot.slane %v1162_v21, %v2152_v50  ;;  %v1264_v23 = vrot.slane %v1259_v22, 2  ;;  %v1265_v24 = vrot.slane %v1259_v22, 3  ;;  %v1812_v25 = vpop.f32.mrb[11].mxu1  ;;  %v1823_v26 = vpop.f32.mrb[13].mxu0 }
 0x649   :  { %v1174_v27 = vcombine.high %v1173_v4, %v1173_v4  ;;  %v1181_v28 = vrot.slane %v1173_v4, %v2152_v50  ;;  %v1268_v29 = vadd.f32 %v1264_v23, %v2131_v36  ;;  %v1269_v30 = vadd.f32 %v1265_v24, %v2133_v38 }
 0x64b   :  { %v1188_v31 = vrot.slane %v1174_v27, %v2152_v50  ;;  %1191 = vst.msk [vmem:[%s2357_s5 + $0x5] sm:$0x1] %vm262_vm4, %v1181_v28  ;;  %1990 = vtanh.f32 %v1268_v29 }
 0x64c   :  { %1992 = vtanh.f32 %v1269_v30 }
 0x64d   :  { %1192 = vst.msk [vmem:[%s2357_s5 + $0xd] sm:$0x1] %vm262_vm4, %v1188_v31 }
 0x655   :  { %v1991_v10 = vpop.eup %1990 }
 0x656   :  { %v1993_v32 = vpop.eup %1992  ;;  %1273 = vst.msk [vmem:[#allocation2] sm:$0x40] %vm1272_vm10, %v1991_v10  ;;  %v1277_v33 = vrot.slane %v1991_v10, 6 }
 0x657   :  { %1274 = vst.msk [vmem:[#allocation2 + $0x8] sm:$0x40] %vm1272_vm10, %v1993_v32  ;;  %v1278_v34 = vrot.slane %v1993_v32, 5 }
 0x659   :  { %v1279_v35 = vsel %vm163_vm2, %v1278_v34, %v1277_v33 }
 0x65a   :  { %1833 = vmatmul.mubr.msk.f32.vlgmr.msra.gmra.mrb[12].mxu1 %vm75_vm3, %v1279_v35  ;;  %1844 = vmatmul.mubr.msk.f32.vlgmr.msra.gmra.mrb[14].mxu0 %vm75_vm3, %v1279_v35 }
 0x65b   :  { %1949 = vmatpush3.bf16.msra.mxu1 %v2111_v14  ;;  %1854 = vmatprep.mubr.msk.f32.mxu1 %vm2023_vm0, %v2024_v6 }
 0x65c   :  { %1950 = vmatprep.subr.bf16.mxu1 %v2022_v3 }
 0x65f   :  { %1952 = vmatpush3.bf16.msra.mxu1 %v2121_v17 }
 0x72d   :  { %v1348_v37 = vpop.f32.mrb[12].mxu1  ;;  %v1445_v39 = vpop.f32.mrb[14].mxu0 }
 0x72e   :  { %v1359_v40 = vrot.slane %v1348_v37, %v2152_v50  ;;  %v1450_v41 = vrot.slane %v1445_v39, 1  ;;  %v1451_v42 = vrot.slane %v1445_v39, 2  ;;  %v1834_v43 = vpop.f32.mrb[13].mxu1  ;;  %v1845_v44 = vpop.f32.mrb[15].mxu0 }
 0x730   :  { %v1360_v45 = vcombine.high %v1359_v40, %v1359_v40  ;;  %v1367_v46 = vrot.slane %v1359_v40, %v2152_v50  ;;  %v1454_v14 = vadd.f32 %v1450_v41, %v2131_v36  ;;  %v1455_v47 = vadd.f32 %v1451_v42, %v2133_v38 }
 0x732   :  { %v1374_v6 = vrot.slane %v1360_v45, %v2152_v50  ;;  %1377 = vst.msk [vmem:[%s2357_s5 + $0x6] sm:$0x1] %vm262_vm4, %v1367_v46  ;;  %1994 = vtanh.f32 %v1454_v14 }
 0x733   :  { %1996 = vtanh.f32 %v1455_v47 }
 0x734   :  { %1378 = vst.msk [vmem:[%s2357_s5 + $0xe] sm:$0x1] %vm262_vm4, %v1374_v6 }
 0x73c   :  { %v1995_v3 = vpop.eup %1994 }
 0x73d   :  { %v1997_v17 = vpop.eup %1996  ;;  %1459 = vst.msk [vmem:[#allocation2] sm:$0x80] %vm1458_vm11, %v1995_v3  ;;  %v1463_v36 = vrot.slane %v1995_v3, 7 }
 0x73e   :  { %1460 = vst.msk [vmem:[#allocation2 + $0x8] sm:$0x80] %vm1458_vm11, %v1997_v17  ;;  %v1464_v38 = vrot.slane %v1997_v17, 6 }
 0x740   :  { %v1465_v48 = vsel %vm163_vm2, %v1464_v38, %v1463_v36 }
 0x741   :  { %1855 = vmatmul.mubr.msk.f32.vlgmr.msra.gmra.mrb[14].mxu1 %vm75_vm3, %v1465_v48 }
 0x742   :  { %2009 = shalt.err (!%p2006_p4)
}
 0x743   :  { %s2010_s20 = scalar_lea.hbm %s2358_s6, 256 }
 0x744   :  { %p2011_p5 = scmp.ne.s32.totalorder %s2358_s6, %s2010_s20  ;;  %p2014_p6 = scmp.lt.u32.totalorder %s2010_s20, %s2358_s6 }
 0x746   :  { %p2016_p7 = pnand %p2014_p6, %p2011_p5 }
 0x748   :  { %2019 = shalt.err (!%p2016_p7)
}
 0x749   :  { %s2029_s25 = smov 128   ;;  %s2030_s26 = smov 8  }
 0x74a   :  { %1578 = dma.vmem_to_hbm [thread:$0]  %s1573_s1, 256, %s2358_s6, [#allocation3], %s2029_s25, %s2029_s25, %s2030_s26  }
 0x814   :  { %v1534_v49 = vpop.f32.mrb[14].mxu1 }
 0x815   :  { %v1545_v51 = vrot.slane %v1534_v49, %v2152_v50  ;;  %v1856_v52 = vpop.f32.mrb[15].mxu1 }
 0x817   :  { %v1546_v53 = vcombine.high %v1545_v51, %v1545_v51  ;;  %v1553_v54 = vrot.slane %v1545_v51, %v2152_v50 }
 0x819   :  { %v1560_v55 = vrot.slane %v1546_v53, %v2152_v50  ;;  %1563 = vst.msk [vmem:[%s2357_s5 + $0x7] sm:$0x1] %vm262_vm4, %v1553_v54 }
 0x81b   :  { %1564 = vst.msk [vmem:[%s2357_s5 + $0xf] sm:$0x1] %vm262_vm4, %v1560_v55 }
 0x81c   :  { %2020 = dma.done.wait [#allocation3], 256  }
 0x81d   :  { %2021 = vsyncadd [#allocation3], 4294967040 }
 0x81e   :  { %1584 = vsyncpa [#allocation3], 1 }

</bundles_post_ra>
